<compile_context>
chip_gen: v7x
topology: tpu7x:2x2x1
jax: 0.10.0
libtpu: 0.0.40
codegen_flags: <defaults>
</compile_context>

<pallas_src>
import jax
import jax.numpy as jnp
from jax.experimental import pallas as pl
from jax.experimental.pallas import tpu as pltpu

_LANE = 128
_SUBLANE = 8
_VMEM_BUDGET = 48 * 1024 * 1024  # tile budget safe on v5e/v6e (128 MiB) and v7x (64 MiB)


def _round_up(v, m):
    return ((v + m - 1) // m) * m


def _pick_tile(total, pref, align):
    # Full extent when small (always a legal block), else an aligned tile.
    if total <= pref:
        return total
    return max(align, (pref // align) * align)


def _shrink_tile(tile, align):
    if tile <= align:
        return tile
    return max(align, ((tile // 2) // align) * align)


def _invariant_spec(block_shape, index_map, single_buffer):
    # Grid-invariant operand: its block index never changes, so the second
    # pipeline buffer is pure VMEM waste -> single-buffer it when supported.
    if single_buffer:
        return pl.BlockSpec(block_shape, index_map, pipeline_mode=pl.Buffered(1))
    return pl.BlockSpec(block_shape, index_map)


# ----------------------------- kernels --------------------------------------


def _delta_w_kernel(w_ref, at_ref, dw_ref):
    # delta_w tile = ReLU(weight_tile @ A^T_pad); bf16 out, fp32 accumulation.
    # weight arrives in its caller dtype; cast to bf16 on-chip (no HBM pre-cast).
    w = w_ref[...].astype(jnp.bfloat16)
    dw_ref[...] = jnp.maximum(
        jnp.dot(w, at_ref[...], preferred_element_type=jnp.float32), 0.0
    ).astype(dw_ref.dtype)


def _neat_proj_kernel(x_ref, dw_ref, bt_ref, o_ref, h_ref):
    # h = x @ delta_w depends only on the M tile (grid axis 0): compute it once
    # per M tile (j == 0), keep it as bf16 in VMEM scratch, reuse across j.
    # Grid axis 1 must stay "arbitrary" (sequential) because of this reuse;
    # axis 0 is safely "parallel" (each core re-derives h for its own M tiles).
    @pl.when(pl.program_id(1) == 0)
    def _():
        x_bf = x_ref[...].astype(jnp.bfloat16)  # in-kernel cast: no bf16 x copy in HBM
        h_ref[...] = jnp.dot(
            x_bf, dw_ref[...], preferred_element_type=jnp.float32
        ).astype(h_ref.dtype)

    # Final projection tile: (tm, dpad) @ (dpad, tn) -> (tm, tn), lane-dense out.
    # Padded tail rows of x produce garbage rows here, but the output writeback
    # is masked to the valid region, so they never reach HBM.
    o_ref[...] = jnp.dot(
        h_ref[...], bt_ref[...], preferred_element_type=jnp.float32
    ).astype(o_ref.dtype)


# ------------------------- footprint helpers --------------------------------


def _stage1_vmem(tf, out_dim, dpad, w_bytes):
    return (2 * tf * out_dim * w_bytes      # weight tile (double-buffered)
            + 2 * out_dim * dpad * 2        # A^T (worst case double-buffered)
            + 2 * tf * dpad * 2)            # delta_w output tile


def _stage2_vmem(tm, tn, f_in, dpad, x_bytes, o_bytes):
    return (2 * tm * f_in * x_bytes         # x M-tile (caller dtype)
            + 2 * f_in * dpad * 2           # delta_w (worst case double-buffered)
            + 2 * dpad * tn * 2             # B^T tile
            + 2 * tm * tn * o_bytes         # out tile
            + tm * dpad * 2)                # h scratch (bf16)


def _vmem_limit(footprint):
    return int(min(max(footprint * 1.2 + (2 << 20), 32 << 20), 96 << 20))


# ------------------------------ forward -------------------------------------


def _forward_impl(x2, weight, at_pad, bt_pad, m, f_in, out_dim, dpad, out_dtype,
                  tm, tn, tf, single_buffer_invariant):
    bf16 = jnp.bfloat16
    w_bytes = jnp.dtype(weight.dtype).itemsize
    x_bytes = jnp.dtype(x2.dtype).itemsize
    o_bytes = jnp.dtype(out_dtype).itemsize

    # ---- stage 1: delta_w = ReLU(weight @ A^T) -> (F, dpad), bf16 ----------
    tf_eff = _pick_tile(f_in, tf, _SUBLANE)
    while _stage1_vmem(tf_eff, out_dim, dpad, w_bytes) > _VMEM_BUDGET and tf_eff > _SUBLANE:
        tf_eff = _shrink_tile(tf_eff, _SUBLANE)
    vmem1 = _vmem_limit(_stage1_vmem(tf_eff, out_dim, dpad, w_bytes))

    dw_pad = pl.pallas_call(
        _delta_w_kernel,
        out_shape=jax.ShapeDtypeStruct((f_in, dpad), bf16),
        grid_spec=pltpu.PrefetchScalarGridSpec(
            num_scalar_prefetch=0,
            grid=(pl.cdiv(f_in, tf_eff),),
            in_specs=[
                pl.BlockSpec((tf_eff, out_dim), lambda i: (i, 0)),        # weight tile
                _invariant_spec((out_dim, dpad), lambda i: (0, 0),        # A^T (full, invariant)
                                single_buffer_invariant),
            ],
            out_specs=pl.BlockSpec((tf_eff, dpad), lambda i: (i, 0)),
        ),
        compiler_params=pltpu.CompilerParams(
            dimension_semantics=("parallel",),
            vmem_limit_bytes=vmem1),
    )(weight, at_pad)

    # ---- stage 2: out = (x @ delta_w) @ B^T, tiled over (M, out_dim) -------
    if tn is None:
        # dpad is small for low-rank NEAT (usually 128): widen N tile so each
        # grid step amortizes per-step overhead while staying lane-dense.
        tn = 1024 if dpad <= 256 else 512
    tm_eff = _pick_tile(m, tm, _SUBLANE)
    tn_eff = _pick_tile(out_dim, tn, _LANE)

    # v7x has 2 TensorCores and M is the only "parallel" axis: guarantee >= 2
    # M tiles when M is large enough to split.
    if m >= 256 and pl.cdiv(m, tm_eff) < 2:
        tm_eff = _round_up(pl.cdiv(m, 2), _LANE)

    while (_stage2_vmem(tm_eff, tn_eff, f_in, dpad, x_bytes, o_bytes) > _VMEM_BUDGET
           and (tm_eff > _LANE or tn_eff > _LANE)):
        if tm_eff > _LANE:
            tm_eff = _shrink_tile(tm_eff, _LANE)
        else:
            tn_eff = _shrink_tile(tn_eff, _LANE)
    vmem2 = _vmem_limit(_stage2_vmem(tm_eff, tn_eff, f_in, dpad, x_bytes, o_bytes))

    grid = (pl.cdiv(m, tm_eff), pl.cdiv(out_dim, tn_eff))
    out = pl.pallas_call(
        _neat_proj_kernel,
        out_shape=jax.ShapeDtypeStruct((m, out_dim), out_dtype),
        grid_spec=pltpu.PrefetchScalarGridSpec(
            num_scalar_prefetch=0,
            grid=grid,
            in_specs=[
                pl.BlockSpec((tm_eff, f_in), lambda i, j: (i, 0)),        # x M-tile (caller dtype)
                _invariant_spec((f_in, dpad), lambda i, j: (0, 0),        # delta_w (full, invariant)
                                single_buffer_invariant),
                pl.BlockSpec((dpad, tn_eff), lambda i, j: (0, j)),        # B^T tile
            ],
            out_specs=pl.BlockSpec((tm_eff, tn_eff), lambda i, j: (i, j)),
            scratch_shapes=[pltpu.VMEM((tm_eff, dpad), jnp.bfloat16)],    # h (bf16)
        ),
        compiler_params=pltpu.CompilerParams(
            dimension_semantics=("parallel", "arbitrary"),
            vmem_limit_bytes=vmem2),
    )(x2, dw_pad, bt_pad)
    return out


def neat_vanilla_forward(x, weight, a_w, b_w, *, tm=512, tn=None, tf=512,
                         out_dtype=None):
    """x: (..., F); weight: (F, out_dim); a_w: (dim, out_dim); b_w: (out_dim, dim).

    out_dtype defaults to x.dtype — pass bf16 x (or out_dtype=jnp.bfloat16) to
    halve the M x out_dim writeback stream when fp32 output is not required.
    """
    orig_shape = x.shape
    f_in = orig_shape[-1]
    m = 1
    for s in orig_shape[:-1]:
        m *= s

    dim, out_dim_a = a_w.shape
    out_dim, dim_b = b_w.shape
    assert weight.shape == (f_in, out_dim)
    assert out_dim_a == out_dim and dim_b == dim

    if out_dtype is None:
        out_dtype = x.dtype

    # Pad the rank (dim) axis to a multiple of 128 so the second-stage
    # contraction and the h scratch are lane-aligned.  Padded cols of delta_w
    # are exactly ReLU(0)=0 and padded rows of B^T are 0 -> math unchanged.
    dpad = _round_up(dim, _LANE)
    bf16 = jnp.bfloat16

    # x / weight go to the kernels in their caller dtype (cast to bf16 on-chip,
    # no extra HBM round trip).  A / B are tiny: cast + pad here.
    x2 = x.reshape(m, f_in)
    at_pad = jnp.pad(a_w.T.astype(bf16), ((0, 0), (0, dpad - dim)))   # (out_dim, dpad)
    bt_pad = jnp.pad(b_w.T.astype(bf16), ((0, dpad - dim), (0, 0)))   # (dpad, out_dim)

    args = (x2, weight, at_pad, bt_pad, m, f_in, out_dim, dpad, out_dtype, tm, tn, tf)
    try:
        out = _forward_impl(*args, single_buffer_invariant=True)
    except Exception:
        # pl.Buffered(1) (single-buffer grid-invariant operands) not supported
        # on this jax/Mosaic build -> fall back to default double-buffering.
        out = _forward_impl(*args, single_buffer_invariant=False)
    return out.reshape(*orig_shape[:-1], out_dim)


def neat_ref(x, weight, a_w, b_w):
    """Pure-JAX fp32 reference mirroring the PyTorch forward."""
    delta_w = jax.nn.relu(weight @ a_w.T)
    return (x @ delta_w) @ b_w.T


if __name__ == "__main__":
    key = jax.random.PRNGKey(0)

    # --- test 1: module-faithful shapes & init (B == 0 -> output exactly 0) --
    batch, seq = 2, 8
    f_in, out_dim, dim = 128, 256, 32
    k1, k2, k3, k4 = jax.random.split(key, 4)
    x = jax.random.normal(k1, (batch, seq, f_in), dtype=jnp.float32)
    weight = jax.random.normal(k2, (f_in, out_dim), dtype=jnp.float32) * 0.05
    bound = 1.0 / (out_dim ** 0.5)
    a_w = jax.random.uniform(k3, (dim, out_dim), minval=-bound, maxval=bound,
                             dtype=jnp.float32)
    b_w = jnp.zeros((out_dim, dim), jnp.float32)   # nn.init.zeros_(self.B.weight)

    out = jax.block_until_ready(neat_vanilla_forward(x, weight, a_w, b_w))
    assert out.shape == (batch, seq, out_dim)
    assert jnp.allclose(out, neat_ref(x, weight, a_w, b_w), atol=1e-6, rtol=0.0)

    # --- test 2: non-zero B, bf16 kernel vs fp32 reference -------------------
    b_w_nz = jax.random.normal(k4, (out_dim, dim), dtype=jnp.float32) * 0.1
    out_nz = jax.block_until_ready(neat_vanilla_forward(x, weight, a_w, b_w_nz))
    ref_nz = neat_ref(x, weight, a_w, b_w_nz)
    scale = float(jnp.max(jnp.abs(ref_nz))) + 1e-6
    assert float(jnp.max(jnp.abs(out_nz - ref_nz))) <= 3e-2 * scale

    # --- test 3: multi-tile grid (tail M tile, several out_dim tiles) --------
    k5, k6, k7, k8 = jax.random.split(jax.random.PRNGKey(1), 4)
    batch2, seq2, f2, o2, d2 = 2, 160, 192, 384, 40           # M=320, dpad=128
    x2 = jax.random.normal(k5, (batch2, seq2, f2), dtype=jnp.float32)
    w2 = jax.random.normal(k6, (f2, o2), dtype=jnp.float32) * 0.2
    a2 = jax.random.normal(k7, (d2, o2), dtype=jnp.float32) * 0.05
    b2 = jax.random.normal(k8, (o2, d2), dtype=jnp.float32) * 0.1

    ref2 = neat_ref(x2, w2, a2, b2)
    s2 = float(jnp.max(jnp.abs(ref2))) + 1e-6
    # default tiles: exercises the >=2-M-tile split (v7x balance) + tail tile
    o_def = jax.block_until_ready(neat_vanilla_forward(x2, w2, a2, b2))
    assert float(jnp.max(jnp.abs(o_def - ref2))) <= 3e-2 * s2
    # forced small tiles: exercises the multi-(i, j) grid and h-scratch reuse
    o_sml = jax.block_until_ready(
        neat_vanilla_forward(x2, w2, a2, b2, tm=128, tn=128, tf=64))
    assert float(jnp.max(jnp.abs(o_sml - ref2))) <= 3e-2 * s2

    print("KERNEL_OK")
</pallas_src>

<mosaic_0001>
module attributes {stable_mosaic.version = 11 : i64} {
  func.func @_delta_w_kernel(%arg0: i32, %arg1: memref<128x256xf32, #tpu.memory_space<vmem>>, %arg2: memref<256x128xbf16, #tpu.memory_space<vmem>>, %arg3: memref<128x128xbf16, #tpu.memory_space<vmem>>) attributes {dimension_semantics = [#tpu.dimension_semantics<parallel>], iteration_bounds = array<i64: 1>, scalar_prefetch = 0 : i64, scratch_operands = 0 : i64, tpu.core_type = #tpu.core_type<tc>, window_params = [{transform_indices = @transform_0, window_bounds = array<i64: 128, 256>}, {pipeline_mode = #tpu.pipeline_mode<synchronous>, transform_indices = @transform_1, window_bounds = array<i64: 256, 128>}, {transform_indices = @transform_2, window_bounds = array<i64: 128, 128>}]} {
    %c0 = arith.constant 0 : index
    %c0_0 = arith.constant 0 : index
    %0 = vector.load %arg1[%c0, %c0_0] : memref<128x256xf32, #tpu.memory_space<vmem>>, vector<128x256xf32>
    %1 = arith.truncf %0 : vector<128x256xf32> to vector<128x256xbf16>
    %c0_1 = arith.constant 0 : index
    %c0_2 = arith.constant 0 : index
    %2 = vector.load %arg2[%c0_1, %c0_2] : memref<256x128xbf16, #tpu.memory_space<vmem>>, vector<256x128xbf16>
    %cst = arith.constant dense<0.000000e+00> : vector<128x128xf32>
    %3 = tpu.matmul %1, %2, %cst {dimension_numbers = #tpu.dot_dimension_numbers<[1], [0], [0], [1], [0, 0, 1, 1], [], []>} : vector<128x256xbf16>, vector<256x128xbf16>, vector<128x128xf32> -> vector<128x128xf32>
    %cst_3 = arith.constant 0.000000e+00 : f32
    %4 = vector.broadcast %cst_3 : f32 to vector<128x128xf32>
    %5 = arith.maximumf %3, %4 : vector<128x128xf32>
    %6 = arith.truncf %5 : vector<128x128xf32> to vector<128x128xbf16>
    %c0_4 = arith.constant 0 : index
    %c0_5 = arith.constant 0 : index
    %7 = vector.load %arg3[%c0_4, %c0_5] : memref<128x128xbf16, #tpu.memory_space<vmem>>, vector<128x128xbf16>
    tpu.vector_store %arg3[%c0_4, %c0_5], %6 {strides = array<i32>} : memref<128x128xbf16, #tpu.memory_space<vmem>>, vector<128x128xbf16>,
    return
  }
  func.func @transform_0(%arg0: i32) -> (i32, i32) {
    %c0_i32 = arith.constant 0 : i32
    %c0_i32_0 = arith.constant 0 : i32
    return %arg0, %c0_i32 : i32, i32
  }
  func.func @transform_1(%arg0: i32) -> (i32, i32) {
    %c0_i32 = arith.constant 0 : i32
    %c0_i32_0 = arith.constant 0 : i32
    %c0_i32_1 = arith.constant 0 : i32
    return %c0_i32, %c0_i32_0 : i32, i32
  }
  func.func @transform_2(%arg0: i32) -> (i32, i32) {
    %c0_i32 = arith.constant 0 : i32
    %c0_i32_0 = arith.constant 0 : i32
    return %arg0, %c0_i32 : i32, i32
  }
}

module attributes {stable_mosaic.version = 11 : i64} {
  func.func @_delta_w_kernel(%arg0: i32, %arg1: memref<128x256xf32, #tpu.memory_space<vmem>>, %arg2: memref<256x128xbf16, #tpu.memory_space<vmem>>, %arg3: memref<128x128xbf16, #tpu.memory_space<vmem>>) attributes {dimension_semantics = [#tpu.dimension_semantics<parallel>], iteration_bounds = array<i64: 1>, scalar_prefetch = 0 : i64, scratch_operands = 0 : i64, tpu.core_type = #tpu.core_type<tc>, window_params = [{transform_indices = @transform_0, window_bounds = array<i64: 128, 256>}, {pipeline_mode = #tpu.pipeline_mode<synchronous>, transform_indices = @transform_1, window_bounds = array<i64: 256, 128>}, {transform_indices = @transform_2, window_bounds = array<i64: 128, 128>}]} {
    %c0 = arith.constant 0 : index
    %c0_0 = arith.constant 0 : index
    %0 = vector.load %arg1[%c0, %c0_0] : memref<128x256xf32, #tpu.memory_space<vmem>>, vector<128x256xf32>
    %1 = arith.truncf %0 : vector<128x256xf32> to vector<128x256xbf16>
    %c0_1 = arith.constant 0 : index
    %c0_2 = arith.constant 0 : index
    %2 = vector.load %arg2[%c0_1, %c0_2] : memref<256x128xbf16, #tpu.memory_space<vmem>>, vector<256x128xbf16>
    %cst = arith.constant dense<0.000000e+00> : vector<128x128xf32>
    %3 = tpu.matmul %1, %2, %cst {dimension_numbers = #tpu.dot_dimension_numbers<[1], [0], [0], [1], [0, 0, 1, 1], [], []>} : vector<128x256xbf16>, vector<256x128xbf16>, vector<128x128xf32> -> vector<128x128xf32>
    %cst_3 = arith.constant 0.000000e+00 : f32
    %4 = vector.broadcast %cst_3 : f32 to vector<128x128xf32>
    %5 = arith.maximumf %3, %4 : vector<128x128xf32>
    %6 = arith.truncf %5 : vector<128x128xf32> to vector<128x128xbf16>
    %c0_4 = arith.constant 0 : index
    %c0_5 = arith.constant 0 : index
    %7 = vector.load %arg3[%c0_4, %c0_5] : memref<128x128xbf16, #tpu.memory_space<vmem>>, vector<128x128xbf16>
    tpu.vector_store %arg3[%c0_4, %c0_5], %6 {strides = array<i32>} : memref<128x128xbf16, #tpu.memory_space<vmem>>, vector<128x128xbf16>,
    return
  }
  func.func @transform_0(%arg0: i32) -> (i32, i32) {
    %c0_i32 = arith.constant 0 : i32
    %c0_i32_0 = arith.constant 0 : i32
    return %arg0, %c0_i32 : i32, i32
  }
  func.func @transform_1(%arg0: i32) -> (i32, i32) {
    %c0_i32 = arith.constant 0 : i32
    %c0_i32_0 = arith.constant 0 : i32
    %c0_i32_1 = arith.constant 0 : i32
    return %c0_i32, %c0_i32_0 : i32, i32
  }
  func.func @transform_2(%arg0: i32) -> (i32, i32) {
    %c0_i32 = arith.constant 0 : i32
    %c0_i32_0 = arith.constant 0 : i32
    return %arg0, %c0_i32 : i32, i32
  }
}

</mosaic_0001>

<bundles_post_ra>
// kernel: tpu_custom_call.1
= control target key start
LH: loop header
LB: loop body
LE: loop exit
PB: predicated region body
PF: predicated region fallthrough
CT: control target
= control target key end

     0   :  { %7 = vsyncpa [#allocation3], 0  ;;  %s762_s0 = inlined_call_operand.hbm [shape: f32[128,256], index: 0, kind: input, shape index: {}]   ;;  %s763_s1 = inlined_call_operand.hbm [shape: bf16[256,128], index: 1, kind: input, shape index: {}]   ;;  %s764_s2 = inlined_call_operand.hbm [shape: bf16[128,128], index: 2, kind: output, shape index: {}]  }
   0x1   :  { %8 = vsyncpa [#allocation6], 0 }
   0x2   :  { %9 = vsyncpa [#allocation4], 0  ;;  %s698_s9 = smov [#allocation2]   ;;  %s626_s13 = scalar_lea.hbm %s762_s0, 4096 }
   0x3   :  { %s15_s10 = sshll.u32 %s698_s9, 4  ;;  %p627_p0 = scmp.ne.s32.totalorder %s762_s0, %s626_s13  ;;  %s16_s10 = int_to_ptr.vmem [resolvable:$true] %s15_s10 }
   0x4   :  { %p630_p1 = scmp.lt.u32.totalorder %s626_s13, %s762_s0 }
   0x6   :  { %p632_p2 = pnand %p630_p1, %p627_p0 }
   0x8   :  { %635 = shalt.err (!%p632_p2)
}
   0x9   :  { %s636_s18 = scalar_lea.vmem %s16_s10, 4096  ;;  %p641_p4 = scmp.lt.s32.totalorder %s16_s10, %s16_s10 }
   0xa   :  { %p637_p3 = scmp.ne.s32.totalorder %s16_s10, %s636_s18  ;;  %p642_p5 = scmp.lt.s32.totalorder %s636_s18, %s636_s18 }
   0xc   :  { %p643_p6 = por %p642_p5, %p641_p4 }
   0xe   :  { %p644_p7 = pnand %p643_p6, %p637_p3 }
  0x10   :  { %647 = shalt.err (!%p644_p7)
}
  0x11   :  { %s699_s19 = smov 256   ;;  %s700_s20 = smov 16  }
  0x12   :  { %21 = dma.hbm_to_vmem [thread:$0]  %s762_s0, 4096, %s16_s10, [#allocation3], %s699_s19, %s699_s19, %s700_s20  }
  0x13   :  { %s701_s23 = smov [#allocation5]   ;;  %s648_s27 = scalar_lea.hbm %s763_s1, 2048 }
  0x14   :  { %s27_s24 = sshll.u32 %s701_s23, 4  ;;  %p649_p8 = scmp.ne.s32.totalorder %s763_s1, %s648_s27  ;;  %s28_s24 = int_to_ptr.vmem [resolvable:$true] %s27_s24 }
  0x15   :  { %p652_p9 = scmp.lt.u32.totalorder %s648_s27, %s763_s1 }
  0x17   :  { %p654_p10 = pnand %p652_p9, %p649_p8 }
  0x19   :  { %657 = shalt.err (!%p654_p10)
}
  0x1a   :  { %s658_s4 = scalar_lea.vmem %s28_s24, 2048  ;;  %p663_p12 = scmp.lt.s32.totalorder %s28_s24, %s28_s24 }
  0x1b   :  { %p659_p11 = scmp.ne.s32.totalorder %s28_s24, %s658_s4  ;;  %p664_p13 = scmp.lt.s32.totalorder %s658_s4, %s658_s4 }
  0x1d   :  { %p665_p0 = por %p664_p13, %p663_p12 }
  0x1f   :  { %p666_p1 = pnand %p665_p0, %p659_p11 }
  0x21   :  { %669 = shalt.err (!%p666_p1)
}
  0x22   :  { %s702_s0 = smov 64   ;;  %s703_s5 = smov 4  }
  0x23   :  { %33 = dma.hbm_to_vmem [thread:$0]  %s763_s1, 2048, %s28_s24, [#allocation6], %s702_s0, %s702_s0, %s703_s5  }
  0x24   :  { %692 = dma.done.wait [#allocation3], 4096  }
  0x25   :  { %693 = vsyncadd [#allocation3], 4294963200 }
  0x26   :  { %694 = dma.done.wait [#allocation6], 2048  }
  0x27   :  { %695 = vsyncadd [#allocation6], 4294965248  ;;  %v610_v0 = vld [vmem:[#allocation5 + $0x40] sm:$0xff]   ;;  %v612_v2 = vld [vmem:[#allocation5 + $0x48] sm:$0xff]   ;;  %s704_s1 = smov [#allocation7]  }
  0x28   :  { %v611_v1 = vld [vmem:[#allocation5] sm:$0xff]   ;;  %523 = vmatprep.subr.bf16.mxu0 %v610_v0  ;;  %587 = vmatprep.subr.bf16.mxu1 %v610_v0  ;;  %v613_v3 = vld [vmem:[#allocation5 + $0x8] sm:$0xff]   ;;  %v614_v4 = vld [vmem:[#allocation5 + $0x50] sm:$0xff]   ;;  %s415_s8 = sshll.u32 %s704_s1, 4  ;;  %s416_s8 = int_to_ptr.vmem [resolvable:$true] %s415_s8 }
  0x29   :  { %524 = vmatpush3.bf16.msra.mxu0 %v611_v1  ;;  %595 = vmatpush3.bf16.msra.mxu1 %v611_v1  ;;  %v615_v5 = vld [vmem:[#allocation5 + $0x10] sm:$0xff]   ;;  %v616_v6 = vld [vmem:[#allocation5 + $0x58] sm:$0xff]   ;;  %v618_v8 = vld [vmem:[#allocation5 + $0x60] sm:$0xff]   ;;  %s670_s9 = scalar_lea.vmem %s416_s8, 1024  ;;  %p675_p3 = scmp.lt.s32.totalorder %s416_s8, %s416_s8 }
  0x2a   :  { %525 = vmatprep.subr.bf16.mxu0 %v612_v2  ;;  %588 = vmatprep.subr.bf16.mxu1 %v612_v2  ;;  %v617_v7 = vld [vmem:[#allocation5 + $0x18] sm:$0xff]   ;;  %v619_v9 = vld [vmem:[#allocation5 + $0x20] sm:$0xff]   ;;  %v620_v10 = vld [vmem:[#allocation5 + $0x68] sm:$0xff]   ;;  %p671_p2 = scmp.ne.s32.totalorder %s416_s8, %s670_s9  ;;  %p676_p4 = scmp.lt.s32.totalorder %s670_s9, %s670_s9 }
  0x2b   :  { %v42_v11 = vld [vmem:[#allocation2 + $0x8] sm:$0xff]  ;;  %v44_v12 = vld [vmem:[#allocation2 + $0x18] sm:$0xff]  ;;  %v622_v18 = vld [vmem:[#allocation5 + $0x70] sm:$0xff]  }
  0x2c   :  { %v58_v13 = vld [vmem:[#allocation2 + $0x88] sm:$0xff]  ;;  %v74_v14 = vpack.c.bf16 %v44_v12, %v42_v11  ;;  %v60_v15 = vld [vmem:[#allocation2 + $0x98] sm:$0xff]  ;;  %v623_v19 = vld [vmem:[#allocation5 + $0x30] sm:$0xff]   ;;  %p677_p5 = por %p676_p4, %p675_p3 }
  0x2d   :  { %526 = vmatpush3.bf16.msra.mxu0 %v613_v3  ;;  %596 = vmatpush3.bf16.msra.mxu1 %v613_v3  ;;  %v82_v16 = vpack.c.bf16 %v60_v15, %v58_v13  ;;  %v621_v17 = vld [vmem:[#allocation5 + $0x28] sm:$0xff]   ;;  %v624_v20 = vld [vmem:[#allocation5 + $0x78] sm:$0xff]   ;;  %v41_v22 = vld [vmem:[#allocation2] sm:$0xff] }
  0x2e   :  { %527 = vmatprep.subr.bf16.mxu0 %v614_v4  ;;  %589 = vmatprep.subr.bf16.mxu1 %v614_v4  ;;  %v625_v21 = vld [vmem:[#allocation5 + $0x38] sm:$0xff]   ;;  %v43_v23 = vld [vmem:[#allocation2 + $0x10] sm:$0xff]  ;;  %v57_v24 = vld [vmem:[#allocation2 + $0x80] sm:$0xff]  ;;  %p678_p6 = pnand %p677_p5, %p671_p2 }
  0x2f   :  { %249 = vmatprep.mubr.bf16.mxu0 %v74_v14  ;;  %281 = vmatprep.mubr.bf16.mxu1 %v82_v16  ;;  %v59_v25 = vld [vmem:[#allocation2 + $0x90] sm:$0xff]  ;;  %v46_v26 = vld [vmem:[#allocation2 + $0x28] sm:$0xff]  ;;  %v48_v27 = vld [vmem:[#allocation2 + $0x38] sm:$0xff]  ;;  %v73_v30 = vpack.c.bf16 %v43_v23, %v41_v22 }
  0x30   :  { %v62_v28 = vld [vmem:[#allocation2 + $0xa8] sm:$0xff]  ;;  %v64_v29 = vld [vmem:[#allocation2 + $0xb8] sm:$0xff]  ;;  %v81_v31 = vpack.c.bf16 %v59_v25, %v57_v24  ;;  %v76_v32 = vpack.c.bf16 %v48_v27, %v46_v26  ;;  %v45_v34 = vld [vmem:[#allocation2 + $0x20] sm:$0xff] }
  0x31   :  { %528 = vmatpush3.bf16.msra.mxu0 %v615_v5  ;;  %597 = vmatpush3.bf16.msra.mxu1 %v615_v5  ;;  %v84_v33 = vpack.c.bf16 %v64_v29, %v62_v28  ;;  %v47_v35 = vld [vmem:[#allocation2 + $0x30] sm:$0xff]  ;;  %v61_v36 = vld [vmem:[#allocation2 + $0xa0] sm:$0xff]  ;;  %v50_v38 = vld [vmem:[#allocation2 + $0x48] sm:$0xff] }
  0x32   :  { %529 = vmatprep.subr.bf16.mxu0 %v616_v6  ;;  %590 = vmatprep.subr.bf16.mxu1 %v616_v6  ;;  %v63_v37 = vld [vmem:[#allocation2 + $0xb0] sm:$0xff]  ;;  %v52_v39 = vld [vmem:[#allocation2 + $0x58] sm:$0xff]  ;;  %v66_v40 = vld [vmem:[#allocation2 + $0xc8] sm:$0xff]  ;;  %v75_v42 = vpack.c.bf16 %v47_v35, %v45_v34 }
  0x33   :  { %v68_v41 = vld [vmem:[#allocation2 + $0xd8] sm:$0xff]  ;;  %v83_v43 = vpack.c.bf16 %v63_v37, %v61_v36  ;;  %v78_v44 = vpack.c.bf16 %v52_v39, %v50_v38  ;;  %v49_v46 = vld [vmem:[#allocation2 + $0x40] sm:$0xff]  ;;  %v51_v47 = vld [vmem:[#allocation2 + $0x50] sm:$0xff] }
  0x34   :  { %v86_v45 = vpack.c.bf16 %v68_v41, %v66_v40  ;;  %v65_v48 = vld [vmem:[#allocation2 + $0xc0] sm:$0xff]  ;;  %v67_v49 = vld [vmem:[#allocation2 + $0xd0] sm:$0xff]  ;;  %v54_v50 = vld [vmem:[#allocation2 + $0x68] sm:$0xff]  ;;  %v77_v54 = vpack.c.bf16 %v51_v47, %v49_v46 }
  0x35   :  { %530 = vmatpush3.bf16.msra.mxu0 %v617_v7  ;;  %598 = vmatpush3.bf16.msra.mxu1 %v617_v7  ;;  %v56_v51 = vld [vmem:[#allocation2 + $0x78] sm:$0xff]  ;;  %v70_v52 = vld [vmem:[#allocation2 + $0xe8] sm:$0xff]  ;;  %v85_v55 = vpack.c.bf16 %v67_v49, %v65_v48  ;;  %v53_v58 = vld [vmem:[#allocation2 + $0x60] sm:$0xff] }
  0x36   :  { %531 = vmatprep.subr.bf16.mxu0 %v618_v8  ;;  %591 = vmatprep.subr.bf16.mxu1 %v618_v8  ;;  %v72_v53 = vld [vmem:[#allocation2 + $0xf8] sm:$0xff]  ;;  %v80_v56 = vpack.c.bf16 %v56_v51, %v54_v50  ;;  %v55_v59 = vld [vmem:[#allocation2 + $0x70] sm:$0xff]  ;;  %v69_v60 = vld [vmem:[#allocation2 + $0xe0] sm:$0xff] }
  0x37   :  { %v88_v57 = vpack.c.bf16 %v72_v53, %v70_v52  ;;  %v71_v61 = vld [vmem:[#allocation2 + $0xf0] sm:$0xff]  ;;  %v79_v62 = vpack.c.bf16 %v55_v59, %v53_v58 }
  0x38   :  { %v87_v63 = vpack.c.bf16 %v71_v61, %v69_v60 }
  0x39   :  { %532 = vmatpush3.bf16.msra.mxu0 %v619_v9  ;;  %599 = vmatpush3.bf16.msra.mxu1 %v619_v9 }
  0x3a   :  { %533 = vmatprep.subr.bf16.mxu0 %v620_v10  ;;  %592 = vmatprep.subr.bf16.mxu1 %v620_v10 }
  0x3d   :  { %534 = vmatpush3.bf16.msra.mxu0 %v621_v17  ;;  %600 = vmatpush3.bf16.msra.mxu1 %v621_v17 }
  0x3e   :  { %535 = vmatprep.subr.bf16.mxu0 %v622_v18  ;;  %593 = vmatprep.subr.bf16.mxu1 %v622_v18 }
  0x41   :  { %536 = vmatpush3.bf16.msra.mxu0 %v623_v19  ;;  %601 = vmatpush3.bf16.msra.mxu1 %v623_v19 }
  0x42   :  { %537 = vmatprep.subr.bf16.mxu0 %v624_v20  ;;  %594 = vmatprep.subr.bf16.mxu1 %v624_v20 }
  0x45   :  { %538 = vmatpush3.bf16.msra.mxu0 %v625_v21  ;;  %602 = vmatpush3.bf16.msra.mxu1 %v625_v21 }
  0x48   :  { %250 = vmatmul.mubr.bf16.vlgmr.msra.gmra.mrb[0].mxu0 %v73_v30  ;;  %282 = vmatmul.mubr.bf16.vlgmr.msra.gmra.mrb[0].mxu1 %v81_v31 }
  0x49   :  { %257 = vmatprep.mubr.bf16.mxu0 %v76_v32  ;;  %289 = vmatprep.mubr.bf16.mxu1 %v84_v33 }
  0x50   :  { %258 = vmatmul.mubr.bf16.gmra.mrb[4].mxu0 %v75_v42  ;;  %290 = vmatmul.mubr.bf16.gmra.mrb[4].mxu1 %v83_v43 }
  0x51   :  { %265 = vmatprep.mubr.bf16.mxu0 %v78_v44  ;;  %297 = vmatprep.mubr.bf16.mxu1 %v86_v45 }
  0x58   :  { %266 = vmatmul.mubr.bf16.gmra.mrb[8].mxu0 %v77_v54  ;;  %298 = vmatmul.mubr.bf16.gmra.mrb[8].mxu1 %v85_v55 }
  0x59   :  { %273 = vmatprep.mubr.bf16.mxu0 %v80_v56  ;;  %305 = vmatprep.mubr.bf16.mxu1 %v88_v57 }
  0x60   :  { %274 = vmatmul.mubr.bf16.gmra.mrb[12].mxu0 %v79_v62  ;;  %306 = vmatmul.mubr.bf16.gmra.mrb[12].mxu1 %v87_v63 }
 0x11b   :  { %v539_v0 = vpop.f32.mrb[0].mxu0  ;;  %v563_v1 = vpop.f32.mrb[0].mxu1 }
 0x11c   :  { %v540_v2 = vpop.f32.mrb[1].mxu0  ;;  %v564_v3 = vpop.f32.mrb[1].mxu1 }
 0x11d   :  { %v541_v4 = vadd.f32 %v540_v2, %v539_v0  ;;  %v565_v5 = vadd.f32 %v564_v3, %v563_v1  ;;  %v542_v6 = vpop.f32.mrb[2].mxu0  ;;  %v566_v7 = vpop.f32.mrb[2].mxu1 }
 0x11e   :  { %v543_v8 = vpop.f32.mrb[3].mxu0  ;;  %v567_v9 = vpop.f32.mrb[3].mxu1 }
 0x11f   :  { %v544_v10 = vadd.f32 %v543_v8, %v542_v6  ;;  %v568_v11 = vadd.f32 %v567_v9, %v566_v7  ;;  %v314_v12 = vmax.f32 %v541_v4, 0.0  ;;  %v322_v13 = vmax.f32 %v565_v5, 0.0 }
 0x121   :  { %v315_v14 = vmax.f32 %v544_v10, 0.0  ;;  %v323_v15 = vmax.f32 %v568_v11, 0.0 }
 0x123   :  { %v479_v16 = vpack.c.bf16 %v315_v14, %v314_v12  ;;  %v499_v17 = vpack.c.bf16 %v323_v15, %v322_v13  ;;  %v545_v18 = vpop.f32.mrb[4].mxu0  ;;  %v569_v19 = vpop.f32.mrb[4].mxu1 }
 0x124   :  { %v546_v20 = vpop.f32.mrb[5].mxu0  ;;  %v570_v21 = vpop.f32.mrb[5].mxu1 }
 0x125   :  { %480 = vst [vmem:[#allocation7] sm:$0xff] %v479_v16   ;;  %519 = vst [vmem:[#allocation7 + $0x20] sm:$0xff] %v499_v17   ;;  %v547_v22 = vadd.f32 %v546_v20, %v545_v18  ;;  %v571_v23 = vadd.f32 %v570_v21, %v569_v19  ;;  %v548_v24 = vpop.f32.mrb[6].mxu0  ;;  %v572_v25 = vpop.f32.mrb[6].mxu1 }
 0x126   :  { %v549_v26 = vpop.f32.mrb[7].mxu0  ;;  %v573_v27 = vpop.f32.mrb[7].mxu1 }
 0x127   :  { %v550_v28 = vadd.f32 %v549_v26, %v548_v24  ;;  %v574_v29 = vadd.f32 %v573_v27, %v572_v25  ;;  %v316_v30 = vmax.f32 %v547_v22, 0.0  ;;  %v324_v31 = vmax.f32 %v571_v23, 0.0 }
 0x129   :  { %v317_v32 = vmax.f32 %v550_v28, 0.0  ;;  %v325_v33 = vmax.f32 %v574_v29, 0.0 }
 0x12b   :  { %v484_v34 = vpack.c.bf16 %v317_v32, %v316_v30  ;;  %v504_v35 = vpack.c.bf16 %v325_v33, %v324_v31  ;;  %v551_v36 = vpop.f32.mrb[8].mxu0  ;;  %v575_v37 = vpop.f32.mrb[8].mxu1 }
 0x12c   :  { %v552_v38 = vpop.f32.mrb[9].mxu0  ;;  %v576_v39 = vpop.f32.mrb[9].mxu1 }
 0x12d   :  { %516 = vst [vmem:[#allocation7 + $0x8] sm:$0xff] %v484_v34   ;;  %520 = vst [vmem:[#allocation7 + $0x28] sm:$0xff] %v504_v35   ;;  %v553_v40 = vadd.f32 %v552_v38, %v551_v36  ;;  %v577_v41 = vadd.f32 %v576_v39, %v575_v37  ;;  %v554_v42 = vpop.f32.mrb[10].mxu0  ;;  %v578_v43 = vpop.f32.mrb[10].mxu1 }
 0x12e   :  { %v555_v44 = vpop.f32.mrb[11].mxu0  ;;  %v579_v45 = vpop.f32.mrb[11].mxu1 }
 0x12f   :  { %v556_v46 = vadd.f32 %v555_v44, %v554_v42  ;;  %v580_v47 = vadd.f32 %v579_v45, %v578_v43  ;;  %v318_v48 = vmax.f32 %v553_v40, 0.0  ;;  %v326_v49 = vmax.f32 %v577_v41, 0.0 }
 0x131   :  { %v319_v50 = vmax.f32 %v556_v46, 0.0  ;;  %v327_v51 = vmax.f32 %v580_v47, 0.0 }
 0x133   :  { %v489_v52 = vpack.c.bf16 %v319_v50, %v318_v48  ;;  %v509_v53 = vpack.c.bf16 %v327_v51, %v326_v49  ;;  %v557_v54 = vpop.f32.mrb[12].mxu0  ;;  %v581_v55 = vpop.f32.mrb[12].mxu1 }
 0x134   :  { %v558_v56 = vpop.f32.mrb[13].mxu0  ;;  %v582_v57 = vpop.f32.mrb[13].mxu1 }
 0x135   :  { %517 = vst [vmem:[#allocation7 + $0x10] sm:$0xff] %v489_v52   ;;  %521 = vst [vmem:[#allocation7 + $0x30] sm:$0xff] %v509_v53   ;;  %v559_v58 = vadd.f32 %v558_v56, %v557_v54  ;;  %v583_v59 = vadd.f32 %v582_v57, %v581_v55  ;;  %v560_v60 = vpop.f32.mrb[14].mxu0  ;;  %v584_v61 = vpop.f32.mrb[14].mxu1 }
 0x136   :  { %v561_v62 = vpop.f32.mrb[15].mxu0  ;;  %v585_v63 = vpop.f32.mrb[15].mxu1 }
 0x137   :  { %v562_v0 = vadd.f32 %v561_v62, %v560_v60  ;;  %v586_v1 = vadd.f32 %v585_v63, %v584_v61  ;;  %v320_v2 = vmax.f32 %v559_v58, 0.0  ;;  %v328_v3 = vmax.f32 %v583_v59, 0.0 }
 0x139   :  { %v321_v4 = vmax.f32 %v562_v0, 0.0  ;;  %v329_v5 = vmax.f32 %v586_v1, 0.0 }
 0x13b   :  { %v494_v6 = vpack.c.bf16 %v321_v4, %v320_v2  ;;  %v514_v7 = vpack.c.bf16 %v329_v5, %v328_v3 }
 0x13d   :  { %518 = vst [vmem:[#allocation7 + $0x18] sm:$0xff] %v494_v6   ;;  %522 = vst [vmem:[#allocation7 + $0x38] sm:$0xff] %v514_v7  }
 0x13e   :  { %681 = shalt.err (!%p678_p6)
}
 0x13f   :  { %s682_s12 = scalar_lea.hbm %s764_s2, 1024 }
 0x140   :  { %p683_p7 = scmp.ne.s32.totalorder %s764_s2, %s682_s12  ;;  %p686_p8 = scmp.lt.u32.totalorder %s682_s12, %s764_s2 }
 0x142   :  { %p688_p9 = pnand %p686_p8, %p683_p7 }
 0x144   :  { %691 = shalt.err (!%p688_p9)
}
 0x145   :  { %421 = dma.vmem_to_hbm [thread:$0]  %s416_s8, 1024, %s764_s2, [#allocation4], %s702_s0, %s702_s0, %s703_s5  }
 0x146   :  { %696 = dma.done.wait [#allocation4], 1024  }
 0x147   :  { %697 = vsyncadd [#allocation4], 4294966272 }
 0x148   :  { %425 = vsyncpa [#allocation3], 1 }
 0x149   :  { %426 = vsyncpa [#allocation6], 1 }
 0x14a   :  { %427 = vsyncpa [#allocation4], 1 }

// kernel: tpu_custom_call.1
= control target key start
LH: loop header
LB: loop body
LE: loop exit
PB: predicated region body
PF: predicated region fallthrough
CT: control target
= control target key end

     0   :  { %7 = vsyncpa [#allocation3], 0  ;;  %s762_s0 = inlined_call_operand.hbm [shape: f32[128,256], index: 0, kind: input, shape index: {}]   ;;  %s763_s1 = inlined_call_operand.hbm [shape: bf16[256,128], index: 1, kind: input, shape index: {}]   ;;  %s764_s2 = inlined_call_operand.hbm [shape: bf16[128,128], index: 2, kind: output, shape index: {}]  }
   0x1   :  { %8 = vsyncpa [#allocation6], 0 }
   0x2   :  { %9 = vsyncpa [#allocation4], 0  ;;  %s698_s9 = smov [#allocation2]   ;;  %s626_s13 = scalar_lea.hbm %s762_s0, 4096 }
   0x3   :  { %s15_s10 = sshll.u32 %s698_s9, 4  ;;  %p627_p0 = scmp.ne.s32.totalorder %s762_s0, %s626_s13  ;;  %s16_s10 = int_to_ptr.vmem [resolvable:$true] %s15_s10 }
   0x4   :  { %p630_p1 = scmp.lt.u32.totalorder %s626_s13, %s762_s0 }
   0x6   :  { %p632_p2 = pnand %p630_p1, %p627_p0 }
   0x8   :  { %635 = shalt.err (!%p632_p2)
}
   0x9   :  { %s636_s18 = scalar_lea.vmem %s16_s10, 4096  ;;  %p641_p4 = scmp.lt.s32.totalorder %s16_s10, %s16_s10 }
   0xa   :  { %p637_p3 = scmp.ne.s32.totalorder %s16_s10, %s636_s18  ;;  %p642_p5 = scmp.lt.s32.totalorder %s636_s18, %s636_s18 }
   0xc   :  { %p643_p6 = por %p642_p5, %p641_p4 }
   0xe   :  { %p644_p7 = pnand %p643_p6, %p637_p3 }
  0x10   :  { %647 = shalt.err (!%p644_p7)
}
  0x11   :  { %s699_s19 = smov 256   ;;  %s700_s20 = smov 16  }
  0x12   :  { %21 = dma.hbm_to_vmem [thread:$0]  %s762_s0, 4096, %s16_s10, [#allocation3], %s699_s19, %s699_s19, %s700_s20  }
  0x13   :  { %s701_s23 = smov [#allocation5]   ;;  %s648_s27 = scalar_lea.hbm %s763_s1, 2048 }
  0x14   :  { %s27_s24 = sshll.u32 %s701_s23, 4  ;;  %p649_p8 = scmp.ne.s32.totalorder %s763_s1, %s648_s27  ;;  %s28_s24 = int_to_ptr.vmem [resolvable:$true] %s27_s24 }
  0x15   :  { %p652_p9 = scmp.lt.u32.totalorder %s648_s27, %s763_s1 }
  0x17   :  { %p654_p10 = pnand %p652_p9, %p649_p8 }
  0x19   :  { %657 = shalt.err (!%p654_p10)
}
  0x1a   :  { %s658_s4 = scalar_lea.vmem %s28_s24, 2048  ;;  %p663_p12 = scmp.lt.s32.totalorder %s28_s24, %s28_s24 }
  0x1b   :  { %p659_p11 = scmp.ne.s32.totalorder %s28_s24, %s658_s4  ;;  %p664_p13 = scmp.lt.s32.totalorder %s658_s4, %s658_s4 }
  0x1d   :  { %p665_p0 = por %p664_p13, %p663_p12 }
  0x1f   :  { %p666_p1 = pnand %p665_p0, %p659_p11 }
  0x21   :  { %669 = shalt.err (!%p666_p1)
}
  0x22   :  { %s702_s0 = smov 64   ;;  %s703_s5 = smov 4  }
  0x23   :  { %33 = dma.hbm_to_vmem [thread:$0]  %s763_s1, 2048, %s28_s24, [#allocation6], %s702_s0, %s702_s0, %s703_s5  }
  0x24   :  { %692 = dma.done.wait [#allocation3], 4096  }
  0x25   :  { %693 = vsyncadd [#allocation3], 4294963200 }
  0x26   :  { %694 = dma.done.wait [#allocation6], 2048  }
  0x27   :  { %695 = vsyncadd [#allocation6], 4294965248  ;;  %v610_v0 = vld [vmem:[#allocation5 + $0x40] sm:$0xff]   ;;  %v612_v2 = vld [vmem:[#allocation5 + $0x48] sm:$0xff]   ;;  %s704_s1 = smov [#allocation7]  }
  0x28   :  { %v611_v1 = vld [vmem:[#allocation5] sm:$0xff]   ;;  %523 = vmatprep.subr.bf16.mxu0 %v610_v0  ;;  %587 = vmatprep.subr.bf16.mxu1 %v610_v0  ;;  %v613_v3 = vld [vmem:[#allocation5 + $0x8] sm:$0xff]   ;;  %v614_v4 = vld [vmem:[#allocation5 + $0x50] sm:$0xff]   ;;  %s415_s8 = sshll.u32 %s704_s1, 4  ;;  %s416_s8 = int_to_ptr.vmem [resolvable:$true] %s415_s8 }
  0x29   :  { %524 = vmatpush3.bf16.msra.mxu0 %v611_v1  ;;  %595 = vmatpush3.bf16.msra.mxu1 %v611_v1  ;;  %v615_v5 = vld [vmem:[#allocation5 + $0x10] sm:$0xff]   ;;  %v616_v6 = vld [vmem:[#allocation5 + $0x58] sm:$0xff]   ;;  %v618_v8 = vld [vmem:[#allocation5 + $0x60] sm:$0xff]   ;;  %s670_s9 = scalar_lea.vmem %s416_s8, 1024  ;;  %p675_p3 = scmp.lt.s32.totalorder %s416_s8, %s416_s8 }
  0x2a   :  { %525 = vmatprep.subr.bf16.mxu0 %v612_v2  ;;  %588 = vmatprep.subr.bf16.mxu1 %v612_v2  ;;  %v617_v7 = vld [vmem:[#allocation5 + $0x18] sm:$0xff]   ;;  %v619_v9 = vld [vmem:[#allocation5 + $0x20] sm:$0xff]   ;;  %v620_v10 = vld [vmem:[#allocation5 + $0x68] sm:$0xff]   ;;  %p671_p2 = scmp.ne.s32.totalorder %s416_s8, %s670_s9  ;;  %p676_p4 = scmp.lt.s32.totalorder %s670_s9, %s670_s9 }
  0x2b   :  { %v42_v11 = vld [vmem:[#allocation2 + $0x8] sm:$0xff]  ;;  %v44_v12 = vld [vmem:[#allocation2 + $0x18] sm:$0xff]  ;;  %v622_v18 = vld [vmem:[#allocation5 + $0x70] sm:$0xff]  }
  0x2c   :  { %v58_v13 = vld [vmem:[#allocation2 + $0x88] sm:$0xff]  ;;  %v74_v14 = vpack.c.bf16 %v44_v12, %v42_v11  ;;  %v60_v15 = vld [vmem:[#allocation2 + $0x98] sm:$0xff]  ;;  %v623_v19 = vld [vmem:[#allocation5 + $0x30] sm:$0xff]   ;;  %p677_p5 = por %p676_p4, %p675_p3 }
  0x2d   :  { %526 = vmatpush3.bf16.msra.mxu0 %v613_v3  ;;  %596 = vmatpush3.bf16.msra.mxu1 %v613_v3  ;;  %v82_v16 = vpack.c.bf16 %v60_v15, %v58_v13  ;;  %v621_v17 = vld [vmem:[#allocation5 + $0x28] sm:$0xff]   ;;  %v624_v20 = vld [vmem:[#allocation5 + $0x78] sm:$0xff]   ;;  %v41_v22 = vld [vmem:[#allocation2] sm:$0xff] }
  0x2e   :  { %527 = vmatprep.subr.bf16.mxu0 %v614_v4  ;;  %589 = vmatprep.subr.bf16.mxu1 %v614_v4  ;;  %v625_v21 = vld [vmem:[#allocation5 + $0x38] sm:$0xff]   ;;  %v43_v23 = vld [vmem:[#allocation2 + $0x10] sm:$0xff]  ;;  %v57_v24 = vld [vmem:[#allocation2 + $0x80] sm:$0xff]  ;;  %p678_p6 = pnand %p677_p5, %p671_p2 }
  0x2f   :  { %249 = vmatprep.mubr.bf16.mxu0 %v74_v14  ;;  %281 = vmatprep.mubr.bf16.mxu1 %v82_v16  ;;  %v59_v25 = vld [vmem:[#allocation2 + $0x90] sm:$0xff]  ;;  %v46_v26 = vld [vmem:[#allocation2 + $0x28] sm:$0xff]  ;;  %v48_v27 = vld [vmem:[#allocation2 + $0x38] sm:$0xff]  ;;  %v73_v30 = vpack.c.bf16 %v43_v23, %v41_v22 }
  0x30   :  { %v62_v28 = vld [vmem:[#allocation2 + $0xa8] sm:$0xff]  ;;  %v64_v29 = vld [vmem:[#allocation2 + $0xb8] sm:$0xff]  ;;  %v81_v31 = vpack.c.bf16 %v59_v25, %v57_v24  ;;  %v76_v32 = vpack.c.bf16 %v48_v27, %v46_v26  ;;  %v45_v34 = vld [vmem:[#allocation2 + $0x20] sm:$0xff] }
  0x31   :  { %528 = vmatpush3.bf16.msra.mxu0 %v615_v5  ;;  %597 = vmatpush3.bf16.msra.mxu1 %v615_v5  ;;  %v84_v33 = vpack.c.bf16 %v64_v29, %v62_v28  ;;  %v47_v35 = vld [vmem:[#allocation2 + $0x30] sm:$0xff]  ;;  %v61_v36 = vld [vmem:[#allocation2 + $0xa0] sm:$0xff]  ;;  %v50_v38 = vld [vmem:[#allocation2 + $0x48] sm:$0xff] }
  0x32   :  { %529 = vmatprep.subr.bf16.mxu0 %v616_v6  ;;  %590 = vmatprep.subr.bf16.mxu1 %v616_v6  ;;  %v63_v37 = vld [vmem:[#allocation2 + $0xb0] sm:$0xff]  ;;  %v52_v39 = vld [vmem:[#allocation2 + $0x58] sm:$0xff]  ;;  %v66_v40 = vld [vmem:[#allocation2 + $0xc8] sm:$0xff]  ;;  %v75_v42 = vpack.c.bf16 %v47_v35, %v45_v34 }
  0x33   :  { %v68_v41 = vld [vmem:[#allocation2 + $0xd8] sm:$0xff]  ;;  %v83_v43 = vpack.c.bf16 %v63_v37, %v61_v36  ;;  %v78_v44 = vpack.c.bf16 %v52_v39, %v50_v38  ;;  %v49_v46 = vld [vmem:[#allocation2 + $0x40] sm:$0xff]  ;;  %v51_v47 = vld [vmem:[#allocation2 + $0x50] sm:$0xff] }
  0x34   :  { %v86_v45 = vpack.c.bf16 %v68_v41, %v66_v40  ;;  %v65_v48 = vld [vmem:[#allocation2 + $0xc0] sm:$0xff]  ;;  %v67_v49 = vld [vmem:[#allocation2 + $0xd0] sm:$0xff]  ;;  %v54_v50 = vld [vmem:[#allocation2 + $0x68] sm:$0xff]  ;;  %v77_v54 = vpack.c.bf16 %v51_v47, %v49_v46 }
  0x35   :  { %530 = vmatpush3.bf16.msra.mxu0 %v617_v7  ;;  %598 = vmatpush3.bf16.msra.mxu1 %v617_v7  ;;  %v56_v51 = vld [vmem:[#allocation2 + $0x78] sm:$0xff]  ;;  %v70_v52 = vld [vmem:[#allocation2 + $0xe8] sm:$0xff]  ;;  %v85_v55 = vpack.c.bf16 %v67_v49, %v65_v48  ;;  %v53_v58 = vld [vmem:[#allocation2 + $0x60] sm:$0xff] }
  0x36   :  { %531 = vmatprep.subr.bf16.mxu0 %v618_v8  ;;  %591 = vmatprep.subr.bf16.mxu1 %v618_v8  ;;  %v72_v53 = vld [vmem:[#allocation2 + $0xf8] sm:$0xff]  ;;  %v80_v56 = vpack.c.bf16 %v56_v51, %v54_v50  ;;  %v55_v59 = vld [vmem:[#allocation2 + $0x70] sm:$0xff]  ;;  %v69_v60 = vld [vmem:[#allocation2 + $0xe0] sm:$0xff] }
  0x37   :  { %v88_v57 = vpack.c.bf16 %v72_v53, %v70_v52  ;;  %v71_v61 = vld [vmem:[#allocation2 + $0xf0] sm:$0xff]  ;;  %v79_v62 = vpack.c.bf16 %v55_v59, %v53_v58 }
  0x38   :  { %v87_v63 = vpack.c.bf16 %v71_v61, %v69_v60 }
  0x39   :  { %532 = vmatpush3.bf16.msra.mxu0 %v619_v9  ;;  %599 = vmatpush3.bf16.msra.mxu1 %v619_v9 }
  0x3a   :  { %533 = vmatprep.subr.bf16.mxu0 %v620_v10  ;;  %592 = vmatprep.subr.bf16.mxu1 %v620_v10 }
  0x3d   :  { %534 = vmatpush3.bf16.msra.mxu0 %v621_v17  ;;  %600 = vmatpush3.bf16.msra.mxu1 %v621_v17 }
  0x3e   :  { %535 = vmatprep.subr.bf16.mxu0 %v622_v18  ;;  %593 = vmatprep.subr.bf16.mxu1 %v622_v18 }
  0x41   :  { %536 = vmatpush3.bf16.msra.mxu0 %v623_v19  ;;  %601 = vmatpush3.bf16.msra.mxu1 %v623_v19 }
  0x42   :  { %537 = vmatprep.subr.bf16.mxu0 %v624_v20  ;;  %594 = vmatprep.subr.bf16.mxu1 %v624_v20 }
  0x45   :  { %538 = vmatpush3.bf16.msra.mxu0 %v625_v21  ;;  %602 = vmatpush3.bf16.msra.mxu1 %v625_v21 }
  0x48   :  { %250 = vmatmul.mubr.bf16.vlgmr.msra.gmra.mrb[0].mxu0 %v73_v30  ;;  %282 = vmatmul.mubr.bf16.vlgmr.msra.gmra.mrb[0].mxu1 %v81_v31 }
  0x49   :  { %257 = vmatprep.mubr.bf16.mxu0 %v76_v32  ;;  %289 = vmatprep.mubr.bf16.mxu1 %v84_v33 }
  0x50   :  { %258 = vmatmul.mubr.bf16.gmra.mrb[4].mxu0 %v75_v42  ;;  %290 = vmatmul.mubr.bf16.gmra.mrb[4].mxu1 %v83_v43 }
  0x51   :  { %265 = vmatprep.mubr.bf16.mxu0 %v78_v44  ;;  %297 = vmatprep.mubr.bf16.mxu1 %v86_v45 }
  0x58   :  { %266 = vmatmul.mubr.bf16.gmra.mrb[8].mxu0 %v77_v54  ;;  %298 = vmatmul.mubr.bf16.gmra.mrb[8].mxu1 %v85_v55 }
  0x59   :  { %273 = vmatprep.mubr.bf16.mxu0 %v80_v56  ;;  %305 = vmatprep.mubr.bf16.mxu1 %v88_v57 }
  0x60   :  { %274 = vmatmul.mubr.bf16.gmra.mrb[12].mxu0 %v79_v62  ;;  %306 = vmatmul.mubr.bf16.gmra.mrb[12].mxu1 %v87_v63 }
 0x11b   :  { %v539_v0 = vpop.f32.mrb[0].mxu0  ;;  %v563_v1 = vpop.f32.mrb[0].mxu1 }
 0x11c   :  { %v540_v2 = vpop.f32.mrb[1].mxu0  ;;  %v564_v3 = vpop.f32.mrb[1].mxu1 }
 0x11d   :  { %v541_v4 = vadd.f32 %v540_v2, %v539_v0  ;;  %v565_v5 = vadd.f32 %v564_v3, %v563_v1  ;;  %v542_v6 = vpop.f32.mrb[2].mxu0  ;;  %v566_v7 = vpop.f32.mrb[2].mxu1 }
 0x11e   :  { %v543_v8 = vpop.f32.mrb[3].mxu0  ;;  %v567_v9 = vpop.f32.mrb[3].mxu1 }
 0x11f   :  { %v544_v10 = vadd.f32 %v543_v8, %v542_v6  ;;  %v568_v11 = vadd.f32 %v567_v9, %v566_v7  ;;  %v314_v12 = vmax.f32 %v541_v4, 0.0  ;;  %v322_v13 = vmax.f32 %v565_v5, 0.0 }
 0x121   :  { %v315_v14 = vmax.f32 %v544_v10, 0.0  ;;  %v323_v15 = vmax.f32 %v568_v11, 0.0 }
 0x123   :  { %v479_v16 = vpack.c.bf16 %v315_v14, %v314_v12  ;;  %v499_v17 = vpack.c.bf16 %v323_v15, %v322_v13  ;;  %v545_v18 = vpop.f32.mrb[4].mxu0  ;;  %v569_v19 = vpop.f32.mrb[4].mxu1 }
 0x124   :  { %v546_v20 = vpop.f32.mrb[5].mxu0  ;;  %v570_v21 = vpop.f32.mrb[5].mxu1 }
 0x125   :  { %480 = vst [vmem:[#allocation7] sm:$0xff] %v479_v16   ;;  %519 = vst [vmem:[#allocation7 + $0x20] sm:$0xff] %v499_v17   ;;  %v547_v22 = vadd.f32 %v546_v20, %v545_v18  ;;  %v571_v23 = vadd.f32 %v570_v21, %v569_v19  ;;  %v548_v24 = vpop.f32.mrb[6].mxu0  ;;  %v572_v25 = vpop.f32.mrb[6].mxu1 }
 0x126   :  { %v549_v26 = vpop.f32.mrb[7].mxu0  ;;  %v573_v27 = vpop.f32.mrb[7].mxu1 }
 0x127   :  { %v550_v28 = vadd.f32 %v549_v26, %v548_v24  ;;  %v574_v29 = vadd.f32 %v573_v27, %v572_v25  ;;  %v316_v30 = vmax.f32 %v547_v22, 0.0  ;;  %v324_v31 = vmax.f32 %v571_v23, 0.0 }
 0x129   :  { %v317_v32 = vmax.f32 %v550_v28, 0.0  ;;  %v325_v33 = vmax.f32 %v574_v29, 0.0 }
 0x12b   :  { %v484_v34 = vpack.c.bf16 %v317_v32, %v316_v30  ;;  %v504_v35 = vpack.c.bf16 %v325_v33, %v324_v31  ;;  %v551_v36 = vpop.f32.mrb[8].mxu0  ;;  %v575_v37 = vpop.f32.mrb[8].mxu1 }
 0x12c   :  { %v552_v38 = vpop.f32.mrb[9].mxu0  ;;  %v576_v39 = vpop.f32.mrb[9].mxu1 }
 0x12d   :  { %516 = vst [vmem:[#allocation7 + $0x8] sm:$0xff] %v484_v34   ;;  %520 = vst [vmem:[#allocation7 + $0x28] sm:$0xff] %v504_v35   ;;  %v553_v40 = vadd.f32 %v552_v38, %v551_v36  ;;  %v577_v41 = vadd.f32 %v576_v39, %v575_v37  ;;  %v554_v42 = vpop.f32.mrb[10].mxu0  ;;  %v578_v43 = vpop.f32.mrb[10].mxu1 }
 0x12e   :  { %v555_v44 = vpop.f32.mrb[11].mxu0  ;;  %v579_v45 = vpop.f32.mrb[11].mxu1 }
 0x12f   :  { %v556_v46 = vadd.f32 %v555_v44, %v554_v42  ;;  %v580_v47 = vadd.f32 %v579_v45, %v578_v43  ;;  %v318_v48 = vmax.f32 %v553_v40, 0.0  ;;  %v326_v49 = vmax.f32 %v577_v41, 0.0 }
 0x131   :  { %v319_v50 = vmax.f32 %v556_v46, 0.0  ;;  %v327_v51 = vmax.f32 %v580_v47, 0.0 }
 0x133   :  { %v489_v52 = vpack.c.bf16 %v319_v50, %v318_v48  ;;  %v509_v53 = vpack.c.bf16 %v327_v51, %v326_v49  ;;  %v557_v54 = vpop.f32.mrb[12].mxu0  ;;  %v581_v55 = vpop.f32.mrb[12].mxu1 }
 0x134   :  { %v558_v56 = vpop.f32.mrb[13].mxu0  ;;  %v582_v57 = vpop.f32.mrb[13].mxu1 }
 0x135   :  { %517 = vst [vmem:[#allocation7 + $0x10] sm:$0xff] %v489_v52   ;;  %521 = vst [vmem:[#allocation7 + $0x30] sm:$0xff] %v509_v53   ;;  %v559_v58 = vadd.f32 %v558_v56, %v557_v54  ;;  %v583_v59 = vadd.f32 %v582_v57, %v581_v55  ;;  %v560_v60 = vpop.f32.mrb[14].mxu0  ;;  %v584_v61 = vpop.f32.mrb[14].mxu1 }
 0x136   :  { %v561_v62 = vpop.f32.mrb[15].mxu0  ;;  %v585_v63 = vpop.f32.mrb[15].mxu1 }
 0x137   :  { %v562_v0 = vadd.f32 %v561_v62, %v560_v60  ;;  %v586_v1 = vadd.f32 %v585_v63, %v584_v61  ;;  %v320_v2 = vmax.f32 %v559_v58, 0.0  ;;  %v328_v3 = vmax.f32 %v583_v59, 0.0 }
 0x139   :  { %v321_v4 = vmax.f32 %v562_v0, 0.0  ;;  %v329_v5 = vmax.f32 %v586_v1, 0.0 }
 0x13b   :  { %v494_v6 = vpack.c.bf16 %v321_v4, %v320_v2  ;;  %v514_v7 = vpack.c.bf16 %v329_v5, %v328_v3 }
 0x13d   :  { %518 = vst [vmem:[#allocation7 + $0x18] sm:$0xff] %v494_v6   ;;  %522 = vst [vmem:[#allocation7 + $0x38] sm:$0xff] %v514_v7  }
 0x13e   :  { %681 = shalt.err (!%p678_p6)
}
 0x13f   :  { %s682_s12 = scalar_lea.hbm %s764_s2, 1024 }
 0x140   :  { %p683_p7 = scmp.ne.s32.totalorder %s764_s2, %s682_s12  ;;  %p686_p8 = scmp.lt.u32.totalorder %s682_s12, %s764_s2 }
 0x142   :  { %p688_p9 = pnand %p686_p8, %p683_p7 }
 0x144   :  { %691 = shalt.err (!%p688_p9)
}
 0x145   :  { %421 = dma.vmem_to_hbm [thread:$0]  %s416_s8, 1024, %s764_s2, [#allocation4], %s702_s0, %s702_s0, %s703_s5  }
 0x146   :  { %696 = dma.done.wait [#allocation4], 1024  }
 0x147   :  { %697 = vsyncadd [#allocation4], 4294966272 }
 0x148   :  { %425 = vsyncpa [#allocation3], 1 }
 0x149   :  { %426 = vsyncpa [#allocation6], 1 }
 0x14a   :  { %427 = vsyncpa [#allocation4], 1 }

</bundles_post_ra>
